<compile_context>
chip_gen: v7x
topology: tpu7x:2x2x1
jax: 0.10.0
libtpu: 0.0.40
codegen_flags: <defaults>
</compile_context>

<pallas_src>
import functools

import jax
import jax.numpy as jnp
from jax.experimental import pallas as pl
from jax.experimental.pallas import tpu as pltpu


# ---------------------------------------------------------------------------
# Small helpers.
# ---------------------------------------------------------------------------
def _round_up(x, m):
    return (x + m - 1) // m * m


def _pick_divisor_tile(total, preferred, quantum):
    """Largest multiple of `quantum` <= preferred dividing `total`, else total."""
    if total <= preferred:
        return total
    t = (preferred // quantum) * quantum
    while t >= quantum:
        if total % t == 0:
            return t
        t -= quantum
    return total


def _pick_row_tile(H, W, max_block_rows=2048):
    """Source-row tile TH with H % TH == 0 and TH*W <= max_block_rows."""
    for th in range(min(H, max(1, max_block_rows // W)), 0, -1):
        if H % th == 0:
            return th
    return H


def _wrap_pair(i0, n):
    """Periodic wrap of (i0, i0+1) into [0, n). AND trick for power-of-two n."""
    if n & (n - 1) == 0:
        return i0 & (n - 1), (i0 + 1) & (n - 1)
    return jnp.mod(i0, n), jnp.mod(i0 + 1, n)


def _bilinear_factors(phi_ref, H, W):
    """Shared per-output-pixel bilinear quantities from a (2, TP) phi block."""
    px = phi_ref[0:1, :]                       # (1, TP) row coordinate
    py = phi_ref[1:2, :]                       # (1, TP) col coordinate
    x0f = jnp.floor(px)
    y0f = jnp.floor(py)
    fx = px - x0f                              # fractional parts in [0, 1)
    fy = py - y0f
    x0, x1 = _wrap_pair(x0f.astype(jnp.int32), H)
    y0, y1 = _wrap_pair(y0f.astype(jnp.int32), W)
    return fx, fy, x0, x1, y0, y1


# ---------------------------------------------------------------------------
# Warp-matrix build kernels (bilinear weights, periodic boundaries).
# ---------------------------------------------------------------------------
def _build_warp_sep_kernel(phi_ref, wt_ref, *, H, W, TH):
    """Separable build: rows structured as (h, w); requires W % 8 == 0.

    phi_ref : (2, TP) f32 sampling coordinates for this output-pixel tile
    wt_ref  : (TH*W, TP) slab of WT (rows = flat source pixels h*W + w)
    """
    hi = pl.program_id(0)
    TP = phi_ref.shape[1]
    fx, fy, x0, x1, y0, y1 = _bilinear_factors(phi_ref, H, W)

    # Row factor restricted to this tile's source rows h in [hi*TH, hi*TH+TH).
    h_iota = jax.lax.broadcasted_iota(jnp.int32, (TH, TP), 0) + hi * TH
    a = (jnp.where(h_iota == x0, 1.0 - fx, 0.0)
         + jnp.where(h_iota == x1, fx, 0.0))              # (TH, TP)

    # Column factor over all source columns w in [0, W).
    w_iota = jax.lax.broadcasted_iota(jnp.int32, (W, TP), 0)
    b = (jnp.where(w_iota == y0, 1.0 - fy, 0.0)
         + jnp.where(w_iota == y1, fy, 0.0))              # (W, TP)

    # WT[(h*W + w), p] = a[h, p] * b[w, p]  -- single full-size multiply.
    # Reshape is layout-free because W % 8 == 0 (checked by the caller).
    slab = a[:, None, :] * b[None, :, :]                  # (TH, W, TP)
    wt_ref[...] = slab.reshape(TH * W, TP).astype(wt_ref.dtype)


def _build_warp_flat_kernel(phi_ref, wt_ref, *, H, W, TQ):
    """Flat-q build for padded / non-aligned grids.

    Rows are flat source indices q in [qi*TQ, qi*TQ+TQ); rows with q >= H*W
    automatically get weight 0 (q // W >= H never matches a wrapped index),
    which is exactly the zero-padding the chained/precomposed matmuls need.
    """
    qi = pl.program_id(0)
    fx, fy, x0, x1, y0, y1 = _bilinear_factors(phi_ref, H, W)

    q = jax.lax.broadcasted_iota(jnp.int32, (TQ, 1), 0) + qi * TQ   # (TQ, 1)
    h_row = q // W
    w_row = q - h_row * W

    a = (jnp.where(h_row == x0, 1.0 - fx, 0.0)
         + jnp.where(h_row == x1, fx, 0.0))               # (TQ, TP)
    b = (jnp.where(w_row == y0, 1.0 - fy, 0.0)
         + jnp.where(w_row == y1, fy, 0.0))               # (TQ, TP)
    wt_ref[...] = (a * b).astype(wt_ref.dtype)


def _build_warp_matrix(phi_2hw, H, W, HWp, *, out_dtype):
    """phi (2,H,W) -> WT with WT[q, p] = weight(source pixel q -> output pixel p).

    Returns (HW, HW) on the aligned fast path (HWp == HW) or (HWp, HWp) with
    zero pad rows on the general path.
    """
    HW = H * W
    phi = phi_2hw.reshape(2, HW).astype(jnp.float32)

    if HWp == HW and W % 8 == 0:
        th = _pick_row_tile(H, W)
        tp = _pick_divisor_tile(HW, 512, 128)             # lane-dense: HW % 128 == 0
        kernel = functools.partial(_build_warp_sep_kernel, H=H, W=W, TH=th)
        return pl.pallas_call(
            kernel,
            out_shape=jax.ShapeDtypeStruct((HW, HW), out_dtype),
            grid=(H // th, HW // tp),
            in_specs=[pl.BlockSpec((2, tp), lambda hi, pj: (0, pj))],
            out_specs=pl.BlockSpec((th * W, tp), lambda hi, pj: (hi, pj)),
            compiler_params=pltpu.CompilerParams(
                dimension_semantics=("parallel", "parallel")),
        )(phi)

    # General path: pad output-pixel axis to HWp (zero coords in the tail are
    # harmless: those columns are either discarded or multiply zero pad rows).
    if HWp != HW:
        phi = jnp.pad(phi, ((0, 0), (0, HWp - HW)))
    tq = _pick_divisor_tile(HWp, 512, 128)
    tp = _pick_divisor_tile(HWp, 512, 128)
    kernel = functools.partial(_build_warp_flat_kernel, H=H, W=W, TQ=tq)
    return pl.pallas_call(
        kernel,
        out_shape=jax.ShapeDtypeStruct((HWp, HWp), out_dtype),
        grid=(HWp // tq, HWp // tp),
        in_specs=[pl.BlockSpec((2, tp), lambda qi, pj: (0, pj))],
        out_specs=pl.BlockSpec((tq, tp), lambda qi, pj: (qi, pj)),
        compiler_params=pltpu.CompilerParams(
            dimension_semantics=("parallel", "parallel")),
    )(phi)


# ---------------------------------------------------------------------------
# Generic tiled matmul (MXU, f32 accumulator, K-reduction last grid axis).
# ---------------------------------------------------------------------------
def _matmul_kernel(a_ref, b_ref, o_ref, acc_ref):
    @pl.when(pl.program_id(2) == 0)
    def _():
        acc_ref[...] = jnp.zeros_like(acc_ref)

    acc_ref[...] += jnp.dot(a_ref[...], b_ref[...],
                            preferred_element_type=jnp.float32)

    @pl.when(pl.program_id(2) == pl.num_programs(2) - 1)
    def _():
        o_ref[...] = acc_ref[...].astype(o_ref.dtype)


def _tiled_matmul(a, b, *, out_dtype, tm_max=256, tn_max=512, tk_max=512):
    """out = a @ b with (tm, tn, tk) tiling; VMEM stays O(tile^2).

    tm_max=256 matches the 256-wide MXU on v6e/v7x; on v5e (4x128 MXU,
    16 MiB scoped VMEM default) tm_max=128 is marginally better.
    """
    M, K = a.shape
    K2, N = b.shape
    assert K == K2, (a.shape, b.shape)
    tm = _pick_divisor_tile(M, tm_max, 8)
    tn = _pick_divisor_tile(N, tn_max, 128)
    tk = _pick_divisor_tile(K, tk_max, 128)
    return pl.pallas_call(
        _matmul_kernel,
        out_shape=jax.ShapeDtypeStruct((M, N), out_dtype),
        grid_spec=pltpu.PrefetchScalarGridSpec(
            num_scalar_prefetch=0,
            grid=(M // tm, N // tn, K // tk),
            in_specs=[pl.BlockSpec((tm, tk), lambda i, j, k: (i, k)),
                      pl.BlockSpec((tk, tn), lambda i, j, k: (k, j))],
            out_specs=pl.BlockSpec((tm, tn), lambda i, j, k: (i, j)),
            scratch_shapes=[pltpu.VMEM((tm, tn), jnp.float32)]),
        compiler_params=pltpu.CompilerParams(
            dimension_semantics=("parallel", "parallel", "arbitrary")),
    )(a, b)


# ---------------------------------------------------------------------------
# Module-level forward.
# ---------------------------------------------------------------------------
def get_raw_identity(H, W):
    """Identity sampling grid, matching group.get_raw_identity(): (2, H, W)."""
    ii, jj = jnp.meshgrid(jnp.arange(H), jnp.arange(W), indexing="ij")
    return jnp.stack([ii, jj]).astype(jnp.float32)


def representation_forward(I_nchw, base_deformation, perturbation, *,
                           matmul_dtype=jnp.bfloat16, precompose=None):
    """forward(I) = rep(rep(I, base_deformation), perturbation).

    matmul_dtype=bf16 (default): ~3-4x MXU throughput on v6e/v7x, ~1e-2 rel
    error from compounded rounding.  matmul_dtype=f32: bit-faithful warping.
    precompose=None uses the B >= H*W heuristic (precomposition halves the
    per-batch FLOPs, at the cost of one HW x HW x HW matmul).
    """
    N, C, H, W = I_nchw.shape
    HW = H * W
    B = N * C
    HWp = _round_up(HW, 128)          # lane-dense pixel axis
    Bp = _round_up(B, 8)              # sublane-aligned batch (tiny pad only)

    # Warp matrices built exactly once per call, emitted in the matmul dtype.
    wt_base = _build_warp_matrix(base_deformation, H, W, HWp, out_dtype=matmul_dtype)
    wt_pert = _build_warp_matrix(perturbation, H, W, HWp, out_dtype=matmul_dtype)

    img = I_nchw.reshape(B, HW).astype(matmul_dtype)
    if Bp != B or HWp != HW:
        img = jnp.pad(img, ((0, Bp - B), (0, HWp - HW)))

    if precompose is None:
        precompose = B >= HW
    if precompose:
        # out = img @ (WT_base @ WT_pert): halves per-batch MXU work when B >= HW.
        wt_comb = _tiled_matmul(wt_base, wt_pert, out_dtype=matmul_dtype)
        out = _tiled_matmul(img, wt_comb, out_dtype=jnp.float32)
    else:
        # out = (img @ WT_base) @ WT_pert: intermediate kept in matmul_dtype.
        tmp = _tiled_matmul(img, wt_base, out_dtype=matmul_dtype)
        out = _tiled_matmul(tmp, wt_pert, out_dtype=jnp.float32)

    return out[:B, :HW].reshape(N, C, H, W)


# ---------------------------------------------------------------------------
# Pure-JAX reference (gather-based bilinear warp) for validation.
# ---------------------------------------------------------------------------
def _bilinear_warp_reference(img_nchw, phi):
    N, C, H, W = img_nchw.shape
    px, py = phi[0], phi[1]
    x0f = jnp.floor(px)
    y0f = jnp.floor(py)
    fx = px - x0f
    fy = py - y0f
    x0 = jnp.mod(x0f.astype(jnp.int32), H)
    x1 = jnp.mod(x0f.astype(jnp.int32) + 1, H)
    y0 = jnp.mod(y0f.astype(jnp.int32), W)
    y1 = jnp.mod(y0f.astype(jnp.int32) + 1, W)
    g = lambda xi, yi: img_nchw[:, :, xi, yi]
    return ((1.0 - fx) * (1.0 - fy) * g(x0, y0)
            + (1.0 - fx) * fy * g(x0, y1)
            + fx * (1.0 - fy) * g(x1, y0)
            + fx * fy * g(x1, y1))


if __name__ == "__main__":
    N, C, H, W = 2, 4, 16, 16

    key = jax.random.PRNGKey(0)
    k_img, k_d1, k_d2 = jax.random.split(key, 3)
    x = jax.random.normal(k_img, (N, C, H, W), dtype=jnp.float32)

    # Parameters, deterministic per Representation.__init__ / reset_parameters():
    #   perturbation     <- group.get_raw_identity()   (identity grid)
    #   base deformation <- identity grid
    # TODO(synk): Parameter.base bookkeeping (Deformation attached to the
    # Parameter object) is host-side PyTorch plumbing with no kernel equivalent.
    ident = get_raw_identity(H, W)

    # Test 1: freshly-initialized module (identity deformations), f32 path —
    # the double warp must reproduce the input exactly.
    out_id = jax.block_until_ready(
        representation_forward(x, ident, ident, matmul_dtype=jnp.float32))
    assert out_id.shape == x.shape
    assert bool(jnp.allclose(out_id, x, atol=1e-5)), "identity warp mismatch"

    # Test 2: non-trivial deformations (fractional weights, negative/out-of-range
    # coordinates exercising the periodic wrap), default bf16 chained path
    # (B = 8 < HW = 256), checked against a gather-based pure-JAX reference.
    base = ident + 1.7 * jax.random.normal(k_d1, (2, H, W), dtype=jnp.float32)
    pert = ident + 1.3 * jax.random.normal(k_d2, (2, H, W), dtype=jnp.float32)
    ref = _bilinear_warp_reference(_bilinear_warp_reference(x, base), pert)

    out = jax.block_until_ready(representation_forward(x, base, pert))
    assert bool(jnp.allclose(out, ref, atol=1e-1, rtol=1e-1)), "bf16 chained mismatch"

    # Test 3: same inputs through the precomposed-warp branch (the B >= HW path).
    out_pc = jax.block_until_ready(
        representation_forward(x, base, pert, precompose=True))
    assert bool(jnp.allclose(out_pc, ref, atol=1e-1, rtol=1e-1)), "bf16 precompose mismatch"

    print("KERNEL_OK")
</pallas_src>

<mosaic_0001>
module attributes {stable_mosaic.version = 11 : i64} {
  func.func @_build_warp_sep_kernel(%arg0: i32, %arg1: i32, %arg2: memref<2x256xf32, #tpu.memory_space<vmem>>, %arg3: memref<256x256xf32, #tpu.memory_space<vmem>>) attributes {dimension_semantics = [#tpu.dimension_semantics<parallel>, #tpu.dimension_semantics<parallel>], iteration_bounds = array<i64: 1, 1>, scalar_prefetch = 0 : i64, scratch_operands = 0 : i64, tpu.core_type = #tpu.core_type<tc>, window_params = [{transform_indices = @transform_0, window_bounds = array<i64: 2, 256>}, {transform_indices = @transform_1, window_bounds = array<i64: 256, 256>}]} {
    %c0 = arith.constant 0 : index
    %c0_0 = arith.constant 0 : index
    %0 = vector.load %arg2[%c0, %c0_0] : memref<2x256xf32, #tpu.memory_space<vmem>>, vector<1x256xf32>
    %c1 = arith.constant 1 : index
    %c0_1 = arith.constant 0 : index
    %1 = vector.load %arg2[%c1, %c0_1] : memref<2x256xf32, #tpu.memory_space<vmem>>, vector<1x256xf32>
    %2 = math.floor %0 : vector<1x256xf32>
    %3 = math.floor %1 : vector<1x256xf32>
    %4 = arith.subf %0, %2 : vector<1x256xf32>
    %5 = arith.subf %1, %3 : vector<1x256xf32>
    %6 = arith.fptosi %2 : vector<1x256xf32> to vector<1x256xi32>
    %c15_i32 = arith.constant 15 : i32
    %7 = vector.broadcast %c15_i32 : i32 to vector<1x256xi32>
    %8 = arith.andi %6, %7 : vector<1x256xi32>
    %c1_i32 = arith.constant 1 : i32
    %9 = vector.broadcast %c1_i32 : i32 to vector<1x256xi32>
    %10 = arith.addi %6, %9 : vector<1x256xi32>
    %c15_i32_2 = arith.constant 15 : i32
    %11 = vector.broadcast %c15_i32_2 : i32 to vector<1x256xi32>
    %12 = arith.andi %10, %11 : vector<1x256xi32>
    %13 = arith.fptosi %3 : vector<1x256xf32> to vector<1x256xi32>
    %c15_i32_3 = arith.constant 15 : i32
    %14 = vector.broadcast %c15_i32_3 : i32 to vector<1x256xi32>
    %15 = arith.andi %13, %14 : vector<1x256xi32>
    %c1_i32_4 = arith.constant 1 : i32
    %16 = vector.broadcast %c1_i32_4 : i32 to vector<1x256xi32>
    %17 = arith.addi %13, %16 : vector<1x256xi32>
    %c15_i32_5 = arith.constant 15 : i32
    %18 = vector.broadcast %c15_i32_5 : i32 to vector<1x256xi32>
    %19 = arith.andi %17, %18 : vector<1x256xi32>
    %20 = tpu.iota {dimensions = array<i32: 0>} : vector<16x256xi32>
    %c16_i32 = arith.constant 16 : i32
    %21 = arith.muli %arg0, %c16_i32 : i32
    %22 = vector.broadcast %21 : i32 to vector<16x256xi32>
    %23 = arith.addi %20, %22 : vector<16x256xi32>
    %24 = vector.broadcast %8 : vector<1x256xi32> to vector<16x256xi32>
    %25 = arith.cmpi eq, %23, %24 : vector<16x256xi32>
    %cst = arith.constant 1.000000e+00 : f32
    %26 = vector.broadcast %cst : f32 to vector<1x256xf32>
    %27 = arith.subf %26, %4 : vector<1x256xf32>
    %cst_6 = arith.constant 0.000000e+00 : f32
    %28 = vector.shape_cast %27 : vector<1x256xf32> to vector<1x256xf32>
    %29 = vector.broadcast %28 : vector<1x256xf32> to vector<16x256xf32>
    %30 = vector.broadcast %cst_6 : f32 to vector<16x256xf32>
    %31 = arith.select %25, %29, %30 : vector<16x256xi1>, vector<16x256xf32>
    %32 = vector.broadcast %12 : vector<1x256xi32> to vector<16x256xi32>
    %33 = arith.cmpi eq, %23, %32 : vector<16x256xi32>
    %cst_7 = arith.constant 0.000000e+00 : f32
    %34 = vector.shape_cast %4 : vector<1x256xf32> to vector<1x256xf32>
    %35 = vector.broadcast %34 : vector<1x256xf32> to vector<16x256xf32>
    %36 = vector.broadcast %cst_7 : f32 to vector<16x256xf32>
    %37 = arith.select %33, %35, %36 : vector<16x256xi1>, vector<16x256xf32>
    %38 = arith.addf %31, %37 : vector<16x256xf32>
    %39 = tpu.iota {dimensions = array<i32: 0>} : vector<16x256xi32>
    %40 = vector.broadcast %15 : vector<1x256xi32> to vector<16x256xi32>
    %41 = arith.cmpi eq, %39, %40 : vector<16x256xi32>
    %cst_8 = arith.constant 1.000000e+00 : f32
    %42 = vector.broadcast %cst_8 : f32 to vector<1x256xf32>
    %43 = arith.subf %42, %5 : vector<1x256xf32>
    %cst_9 = arith.constant 0.000000e+00 : f32
    %44 = vector.shape_cast %43 : vector<1x256xf32> to vector<1x256xf32>
    %45 = vector.broadcast %44 : vector<1x256xf32> to vector<16x256xf32>
    %46 = vector.broadcast %cst_9 : f32 to vector<16x256xf32>
    %47 = arith.select %41, %45, %46 : vector<16x256xi1>, vector<16x256xf32>
    %48 = vector.broadcast %19 : vector<1x256xi32> to vector<16x256xi32>
    %49 = arith.cmpi eq, %39, %48 : vector<16x256xi32>
    %cst_10 = arith.constant 0.000000e+00 : f32
    %50 = vector.shape_cast %5 : vector<1x256xf32> to vector<1x256xf32>
    %51 = vector.broadcast %50 : vector<1x256xf32> to vector<16x256xf32>
    %52 = vector.broadcast %cst_10 : f32 to vector<16x256xf32>
    %53 = arith.select %49, %51, %52 : vector<16x256xi1>, vector<16x256xf32>
    %54 = arith.addf %47, %53 : vector<16x256xf32>
    %55 = vector.shape_cast %38 : vector<16x256xf32> to vector<16x1x256xf32>
    %56 = vector.shape_cast %54 : vector<16x256xf32> to vector<1x16x256xf32>
    %57 = vector.broadcast %55 : vector<16x1x256xf32> to vector<16x16x256xf32>
    %58 = vector.broadcast %56 : vector<1x16x256xf32> to vector<16x16x256xf32>
    %59 = arith.mulf %57, %58 : vector<16x16x256xf32>
    %60 = vector.shape_cast %59 : vector<16x16x256xf32> to vector<256x256xf32>
    %c0_11 = arith.constant 0 : index
    %c0_12 = arith.constant 0 : index
    %61 = vector.load %arg3[%c0_11, %c0_12] : memref<256x256xf32, #tpu.memory_space<vmem>>, vector<256x256xf32>
    tpu.vector_store %arg3[%c0_11, %c0_12], %60 {strides = array<i32>} : memref<256x256xf32, #tpu.memory_space<vmem>>, vector<256x256xf32>,
    return
  }
  func.func @transform_0(%arg0: i32, %arg1: i32) -> (i32, i32) {
    %c0_i32 = arith.constant 0 : i32
    %c0_i32_0 = arith.constant 0 : i32
    return %c0_i32, %arg1 : i32, i32
  }
  func.func @transform_1(%arg0: i32, %arg1: i32) -> (i32, i32) {
    %c0_i32 = arith.constant 0 : i32
    return %arg0, %arg1 : i32, i32
  }
}

</mosaic_0001>

<bundles_post_ra>
// kernel: tpu_custom_call.1
= control target key start
LH: loop header
LB: loop body
LE: loop exit
PB: predicated region body
PF: predicated region fallthrough
CT: control target
= control target key end

     0   :  { %6 = vsyncpa [#allocation3], 0  ;;  %s843_s0 = inlined_call_operand.hbm [shape: f32[2,256], index: 0, kind: input, shape index: {}]   ;;  %s844_s1 = inlined_call_operand.hbm [shape: f32[256,256], index: 1, kind: output, shape index: {}]  }
   0x1   :  { %7 = vsyncpa [#allocation4], 0  ;;  %s627_s6 = smov [#allocation2]   ;;  %s579_s10 = scalar_lea.hbm %s843_s0, 64 }
   0x2   :  { %s14_s7 = sshll.u32 %s627_s6, 4  ;;  %p580_p0 = scmp.ne.s32.totalorder %s843_s0, %s579_s10  ;;  %s15_s7 = int_to_ptr.vmem [resolvable:$true] %s14_s7 }
   0x3   :  { %p583_p1 = scmp.lt.u32.totalorder %s579_s10, %s843_s0 }
   0x5   :  { %p585_p2 = pnand %p583_p1, %p580_p0 }
   0x7   :  { %588 = shalt.err (!%p585_p2)
}
   0x8   :  { %s589_s15 = scalar_lea.vmem %s15_s7, 64  ;;  %p594_p4 = scmp.lt.s32.totalorder %s15_s7, %s15_s7 }
   0x9   :  { %p590_p3 = scmp.ne.s32.totalorder %s15_s7, %s589_s15  ;;  %p595_p5 = scmp.lt.s32.totalorder %s589_s15, %s589_s15 }
   0xb   :  { %p596_p6 = por %p595_p5, %p594_p4 }
   0xd   :  { %p597_p7 = pnand %p596_p6, %p590_p3 }
   0xf   :  { %600 = shalt.err (!%p597_p7)
}
  0x10   :  { %17 = dma.hbm_to_vmem [thread:$0]  %s843_s0, 64, %s15_s7, [#allocation3]  }
  0x11   :  { %623 = dma.done.wait [#allocation3], 64  }
  0x12   :  { %624 = vsyncadd [#allocation3], 4294967232  ;;  %v36_v0 = vlaneseq  ;;  %v628_v2 = vmov 1966171168   ;;  %s629_s0 = smov [#allocation5]  }
  0x13   :  { %v168_v3 = vunpack.c.l.s4 %v628_v2  ;;  %v21_v4 = vld [vmem:[#allocation2] ss:$2 sm:$0x3]  ;;  %v23_v5 = vld [vmem:[#allocation2 + $0x1] ss:$2 sm:$0x3] }
  0x14   :  { %v654_v1 = vshrl.u32 %v36_v0, 7  ;;  %v24_v6 = vfloor.f32 %v21_v4  ;;  %v25_v7 = vfloor.f32 %v23_v5  ;;  %s558_s18 = sshll.u32 %s629_s0, 4  ;;  %s559_s18 = int_to_ptr.vmem [resolvable:$true] %s558_s18 }
  0x15   :  { %v169_v10 = vunpack.c.0.s8 %v168_v3  ;;  %s601_s19 = scalar_lea.vmem %s559_s18, 8192  ;;  %p606_p9 = scmp.lt.s32.totalorder %s559_s18, %s559_s18 }
  0x16   :  { %v657_v8 = vsub.s32 0, %v654_v1  ;;  %v660_v9 = vsub.s32 1, %v654_v1  ;;  %v26_v11 = vsub.f32 %v21_v4, %v24_v6  ;;  %v27_v12 = vsub.f32 %v23_v5, %v25_v7  ;;  %p602_p8 = scmp.ne.s32.totalorder %s559_s18, %s601_s19  ;;  %p607_p10 = scmp.lt.s32.totalorder %s601_s19, %s601_s19 }
  0x17   :  { %v570_v13 = vtrunc.f32 %v24_v6  ;;  %v572_v14 = vtrunc.f32 %v25_v7  ;;  %v663_v17 = vadd.s32 8, %v654_v1  ;;  %v672_v22 = vsub.s32 %v169_v10, %v654_v1 }
  0x18   :  { %v55_v18 = vsub.f32 1.0, %v26_v11  ;;  %v666_v19 = vrot.slane %v26_v11, %v657_v8  ;;  %v669_v20 = vrot.slane %v26_v11, %v660_v9  ;;  %v114_v21 = vsub.f32 1.0, %v27_v12  ;;  %p608_p11 = por %p607_p10, %p606_p9 }
  0x19   :  { %v571_v15 = vcvt.f32.s32 %v570_v13  ;;  %v573_v16 = vcvt.f32.s32 %v572_v14  ;;  %v146_v30 = vrot.slane %v27_v12, %v657_v8  ;;  %v150_v38 = vrot.slane %v27_v12, %v660_v9 }
  0x1a   :  { %v60_v27 = vrot.slane %v55_v18, %v657_v8  ;;  %v64_v28 = vrot.slane %v55_v18, %v660_v9  ;;  %v119_v29 = vrot.slane %v114_v21, %v657_v8  ;;  %v123_v37 = vrot.slane %v114_v21, %v660_v9  ;;  %p609_p12 = pnand %p608_p11, %p602_p8 }
  0x1b   :  { %v29_v23 = vand.u32 15, %v571_v15  ;;  %v30_v24 = vadd.s32 1, %v571_v15  ;;  %v33_v25 = vand.u32 15, %v573_v16  ;;  %v34_v26 = vadd.s32 1, %v573_v16 }
  0x1d   :  { %v31_v31 = vand.u32 15, %v30_v24  ;;  %v35_v32 = vand.u32 15, %v34_v26  ;;  %v46_v33 = vrot.slane %v29_v23, %v657_v8  ;;  %v50_v34 = vrot.slane %v29_v23, %v660_v9 }
  0x1e   :  { %v105_v35 = vrot.slane %v33_v25, %v657_v8  ;;  %v109_v36 = vrot.slane %v33_v25, %v660_v9 }
  0x1f   :  { %vm51_vm0 = vcmp.eq.s32.totalorder %v654_v1, %v46_v33  ;;  %vm52_vm1 = vcmp.eq.s32.totalorder %v654_v1, %v50_v34  ;;  %v74_v39 = vrot.slane %v31_v31, %v657_v8  ;;  %v78_v40 = vrot.slane %v31_v31, %v660_v9 }
  0x20   :  { %v67_v41 = vsel %vm51_vm0, %v60_v27, 0.0  ;;  %v68_v42 = vsel %vm52_vm1, %v64_v28, 0.0  ;;  %vm110_vm2 = vcmp.eq.s32.totalorder %v654_v1, %v105_v35  ;;  %v133_v43 = vrot.slane %v35_v32, %v657_v8 }
  0x21   :  { %vm79_vm3 = vcmp.eq.s32.totalorder %v654_v1, %v74_v39  ;;  %vm80_vm4 = vcmp.eq.s32.totalorder %v654_v1, %v78_v40  ;;  %v126_v44 = vsel %vm110_vm2, %v119_v29, 0.0  ;;  %vm111_vm5 = vcmp.eq.s32.totalorder %v654_v1, %v109_v36 }
  0x22   :  { %v94_v45 = vsel %vm79_vm3, %v666_v19, 0.0  ;;  %v95_v46 = vsel %vm80_vm4, %v669_v20, 0.0  ;;  %vm138_vm6 = vcmp.eq.s32.totalorder %v654_v1, %v133_v43  ;;  %v127_v47 = vsel %vm111_vm5, %v123_v37, 0.0 }
  0x23   :  { %v98_v48 = vadd.f32 %v94_v45, %v67_v41  ;;  %v99_v49 = vadd.f32 %v95_v46, %v68_v42  ;;  %v153_v50 = vsel %vm138_vm6, %v146_v30, 0.0  ;;  %v137_v51 = vrot.slane %v35_v32, %v660_v9 }
  0x24   :  { %v697_v52 = vadd.f32 %v153_v50, %v126_v44  ;;  %vm112_vm7 = vcmp.eq.s32.totalorder %v663_v17, %v105_v35  ;;  %vm140_vm8 = vcmp.eq.s32.totalorder %v663_v17, %v133_v43  ;;  %vm113_vm9 = vcmp.eq.s32.totalorder %v663_v17, %v109_v36 }
  0x25   :  { %v165_v53 = vcombine.low %v98_v48, %v99_v49  ;;  %vm139_vm10 = vcmp.eq.s32.totalorder %v654_v1, %v137_v51  ;;  %v128_v54 = vsel %vm112_vm7, %v119_v29, 0.0  ;;  %v155_v55 = vsel %vm140_vm8, %v146_v30, 0.0 }
  0x26   :  { %v154_v56 = vsel %vm139_vm10, %v150_v38, 0.0  ;;  %v703_v57 = vadd.f32 %v155_v55, %v128_v54  ;;  %v129_v58 = vsel %vm113_vm9, %v123_v37, 0.0  ;;  %vm141_vm11 = vcmp.eq.s32.totalorder %v663_v17, %v137_v51 }
  0x27   :  { %v173_v59 = vrot.slane %v165_v53, %v672_v22  ;;  %v707_v60 = vadd.f32 %v154_v56, %v127_v47  ;;  %v156_v61 = vsel %vm141_vm11, %v150_v38, 0.0  ;;  %v166_v62 = vcombine.high %v98_v48, %v99_v49 }
  0x28   :  { %v709_v63 = vadd.f32 %v156_v61, %v129_v58  ;;  %vm53_vm12 = vcmp.eq.s32.totalorder %v663_v17, %v46_v33  ;;  %vm54_vm13 = vcmp.eq.s32.totalorder %v663_v17, %v50_v34  ;;  %vm81_vm14 = vcmp.eq.s32.totalorder %v663_v17, %v74_v39 }
  0x29   :  { %v189_v0 = vrot.slane %v173_v59, %v672_v22  ;;  %v181_v1 = vcombine.high %v173_v59, %v173_v59  ;;  %v180_v2 = vrot.slane %v166_v62, %v672_v22  ;;  %v69_v3 = vsel %vm53_vm12, %v60_v27, 0.0 }
  0x2a   :  { %v716_v4 = vsel %vm54_vm13, %v64_v28, 0.0  ;;  %vm82_vm15 = vcmp.eq.s32.totalorder %v663_v17, %v78_v40  ;;  %v96_v5 = vsel %vm81_vm14, %v666_v19, 0.0 }
  0x2b   :  { %v268_v6 = vrot.slane %v189_v0, %v657_v8  ;;  %v272_v7 = vrot.slane %v189_v0, %v660_v9  ;;  %v203_v10 = vrot.slane %v181_v1, %v672_v22  ;;  %v211_v11 = vcombine.high %v189_v0, %v189_v0 }
  0x2c   :  { %v196_v12 = vrot.slane %v180_v2, %v672_v22  ;;  %v182_v13 = vcombine.high %v180_v2, %v180_v2  ;;  %v97_v14 = vsel %vm82_vm15, %v669_v20, 0.0  ;;  %v725_v15 = vadd.f32 %v96_v5, %v69_v3 }
  0x2d   :  { %v425_v16 = vmul.f32 %v268_v6, %v697_v52  ;;  %v426_v17 = vmul.f32 %v272_v7, %v707_v60  ;;  %v427_v18 = vmul.f32 %v268_v6, %v703_v57  ;;  %v428_v19 = vmul.f32 %v272_v7, %v709_v63 }
  0x2e   :  { %v276_v21 = vrot.slane %v203_v10, %v657_v8  ;;  %v280_v23 = vrot.slane %v203_v10, %v660_v9  ;;  %v284_v24 = vrot.slane %v211_v11, %v657_v8  ;;  %v288_v25 = vrot.slane %v211_v11, %v660_v9 }
  0x2f   :  { %489 = vst [vmem:[#allocation5] sm:$0xff] %v425_v16  ;;  %490 = vst [vmem:[#allocation5 + $0x8] sm:$0xff] %v426_v17  ;;  %v213_v20 = vcombine.high %v203_v10, %v203_v10  ;;  %v300_v26 = vrot.slane %v196_v12, %v657_v8  ;;  %v304_v27 = vrot.slane %v196_v12, %v660_v9 }
  0x30   :  { %491 = vst [vmem:[#allocation5 + $0x10] sm:$0xff] %v427_v18  ;;  %492 = vst [vmem:[#allocation5 + $0x18] sm:$0xff] %v428_v19  ;;  %v210_v28 = vrot.slane %v182_v13, %v672_v22  ;;  %v429_v29 = vmul.f32 %v276_v21, %v697_v52  ;;  %v430_v30 = vmul.f32 %v280_v23, %v707_v60 }
  0x31   :  { %v431_v31 = vmul.f32 %v276_v21, %v703_v57  ;;  %v432_v32 = vmul.f32 %v280_v23, %v709_v63  ;;  %v433_v33 = vmul.f32 %v284_v24, %v697_v52  ;;  %v434_v34 = vmul.f32 %v288_v25, %v707_v60 }
  0x32   :  { %v435_v35 = vmul.f32 %v284_v24, %v703_v57  ;;  %v436_v36 = vmul.f32 %v288_v25, %v709_v63  ;;  %493 = vst [vmem:[#allocation5 + $0x20] sm:$0xff] %v429_v29  ;;  %494 = vst [vmem:[#allocation5 + $0x28] sm:$0xff] %v430_v30  ;;  %v292_v37 = vrot.slane %v213_v20, %v657_v8 }
  0x33   :  { %495 = vst [vmem:[#allocation5 + $0x30] sm:$0xff] %v431_v31  ;;  %496 = vst [vmem:[#allocation5 + $0x38] sm:$0xff] %v432_v32  ;;  %v296_v38 = vrot.slane %v213_v20, %v660_v9  ;;  %v441_v39 = vmul.f32 %v300_v26, %v697_v52  ;;  %v442_v40 = vmul.f32 %v304_v27, %v707_v60 }
  0x34   :  { %497 = vst [vmem:[#allocation5 + $0x40] sm:$0xff] %v433_v33  ;;  %498 = vst [vmem:[#allocation5 + $0x48] sm:$0xff] %v434_v34  ;;  %v443_v41 = vmul.f32 %v300_v26, %v703_v57  ;;  %v444_v42 = vmul.f32 %v304_v27, %v709_v63  ;;  %v308_v43 = vrot.slane %v210_v28, %v657_v8 }
  0x35   :  { %499 = vst [vmem:[#allocation5 + $0x50] sm:$0xff] %v435_v35  ;;  %500 = vst [vmem:[#allocation5 + $0x58] sm:$0xff] %v436_v36  ;;  %v312_v44 = vrot.slane %v210_v28, %v660_v9  ;;  %v437_v45 = vmul.f32 %v292_v37, %v697_v52  ;;  %v438_v46 = vmul.f32 %v296_v38, %v707_v60 }
  0x36   :  { %v439_v47 = vmul.f32 %v292_v37, %v703_v57  ;;  %v440_v48 = vmul.f32 %v296_v38, %v709_v63  ;;  %505 = vst [vmem:[#allocation5 + $0x80] sm:$0xff] %v441_v39  ;;  %506 = vst [vmem:[#allocation5 + $0x88] sm:$0xff] %v442_v40  ;;  %v445_v49 = vmul.f32 %v308_v43, %v697_v52 }
  0x37   :  { %507 = vst [vmem:[#allocation5 + $0x90] sm:$0xff] %v443_v41  ;;  %508 = vst [vmem:[#allocation5 + $0x98] sm:$0xff] %v444_v42  ;;  %v446_v50 = vmul.f32 %v312_v44, %v707_v60  ;;  %v447_v51 = vmul.f32 %v308_v43, %v703_v57  ;;  %v448_v53 = vmul.f32 %v312_v44, %v709_v63 }
  0x38   :  { %501 = vst [vmem:[#allocation5 + $0x60] sm:$0xff] %v437_v45  ;;  %502 = vst [vmem:[#allocation5 + $0x68] sm:$0xff] %v438_v46  ;;  %v212_v54 = vcombine.high %v196_v12, %v196_v12  ;;  %v214_v55 = vcombine.high %v210_v28, %v210_v28  ;;  %v101_v56 = vadd.f32 %v97_v14, %v716_v4 }
  0x39   :  { %503 = vst [vmem:[#allocation5 + $0x70] sm:$0xff] %v439_v47  ;;  %504 = vst [vmem:[#allocation5 + $0x78] sm:$0xff] %v440_v48 }
  0x3a   :  { %509 = vst [vmem:[#allocation5 + $0xa0] sm:$0xff] %v445_v49  ;;  %510 = vst [vmem:[#allocation5 + $0xa8] sm:$0xff] %v446_v50  ;;  %v316_v58 = vrot.slane %v212_v54, %v657_v8  ;;  %v320_v59 = vrot.slane %v212_v54, %v660_v9  ;;  %v324_v61 = vrot.slane %v214_v55, %v657_v8 }
  0x3b   :  { %511 = vst [vmem:[#allocation5 + $0xb0] sm:$0xff] %v447_v51  ;;  %512 = vst [vmem:[#allocation5 + $0xb8] sm:$0xff] %v448_v53  ;;  %v328_v62 = vrot.slane %v214_v55, %v660_v9  ;;  %v215_v0 = vcombine.low %v725_v15, %v101_v56  ;;  %v216_v1 = vcombine.high %v725_v15, %v101_v56 }
  0x3c   :  { %v449_v2 = vmul.f32 %v316_v58, %v697_v52  ;;  %v450_v3 = vmul.f32 %v320_v59, %v707_v60  ;;  %v451_v4 = vmul.f32 %v316_v58, %v703_v57  ;;  %v452_v5 = vmul.f32 %v320_v59, %v709_v63 }
  0x3d   :  { %v453_v6 = vmul.f32 %v324_v61, %v697_v52  ;;  %v454_v7 = vmul.f32 %v328_v62, %v707_v60  ;;  %v455_v10 = vmul.f32 %v324_v61, %v703_v57  ;;  %v456_v11 = vmul.f32 %v328_v62, %v709_v63 }
  0x3e   :  { %513 = vst [vmem:[#allocation5 + $0xc0] sm:$0xff] %v449_v2  ;;  %514 = vst [vmem:[#allocation5 + $0xc8] sm:$0xff] %v450_v3  ;;  %v223_v12 = vrot.slane %v215_v0, %v672_v22  ;;  %v230_v13 = vrot.slane %v216_v1, %v672_v22 }
  0x3f   :  { %515 = vst [vmem:[#allocation5 + $0xd0] sm:$0xff] %v451_v4  ;;  %516 = vst [vmem:[#allocation5 + $0xd8] sm:$0xff] %v452_v5 }
  0x40   :  { %517 = vst [vmem:[#allocation5 + $0xe0] sm:$0xff] %v453_v6  ;;  %518 = vst [vmem:[#allocation5 + $0xe8] sm:$0xff] %v454_v7  ;;  %v239_v14 = vrot.slane %v223_v12, %v672_v22  ;;  %v231_v15 = vcombine.high %v223_v12, %v223_v12  ;;  %v246_v16 = vrot.slane %v230_v13, %v672_v22 }
  0x41   :  { %519 = vst [vmem:[#allocation5 + $0xf0] sm:$0xff] %v455_v10  ;;  %520 = vst [vmem:[#allocation5 + $0xf8] sm:$0xff] %v456_v11  ;;  %v232_v17 = vcombine.high %v230_v13, %v230_v13 }
  0x42   :  { %v332_v18 = vrot.slane %v239_v14, %v657_v8  ;;  %v336_v19 = vrot.slane %v239_v14, %v660_v9  ;;  %v253_v21 = vrot.slane %v231_v15, %v672_v22  ;;  %v261_v23 = vcombine.high %v239_v14, %v239_v14 }
  0x43   :  { %v364_v24 = vrot.slane %v246_v16, %v657_v8  ;;  %v368_v25 = vrot.slane %v246_v16, %v660_v9  ;;  %v260_v20 = vrot.slane %v232_v17, %v672_v22  ;;  %v262_v26 = vcombine.high %v246_v16, %v246_v16 }
  0x44   :  { %v457_v27 = vmul.f32 %v332_v18, %v697_v52  ;;  %v458_v28 = vmul.f32 %v336_v19, %v707_v60  ;;  %v459_v29 = vmul.f32 %v332_v18, %v703_v57  ;;  %v460_v30 = vmul.f32 %v336_v19, %v709_v63 }
  0x45   :  { %v340_v31 = vrot.slane %v253_v21, %v657_v8  ;;  %v344_v32 = vrot.slane %v253_v21, %v660_v9  ;;  %v348_v33 = vrot.slane %v261_v23, %v657_v8  ;;  %v352_v34 = vrot.slane %v261_v23, %v660_v9 }
  0x46   :  { %521 = vst [vmem:[#allocation5 + $0x100] sm:$0xff] %v457_v27  ;;  %522 = vst [vmem:[#allocation5 + $0x108] sm:$0xff] %v458_v28  ;;  %v263_v22 = vcombine.high %v253_v21, %v253_v21  ;;  %v473_v35 = vmul.f32 %v364_v24, %v697_v52  ;;  %v474_v36 = vmul.f32 %v368_v25, %v707_v60 }
  0x47   :  { %523 = vst [vmem:[#allocation5 + $0x110] sm:$0xff] %v459_v29  ;;  %524 = vst [vmem:[#allocation5 + $0x118] sm:$0xff] %v460_v30  ;;  %v475_v37 = vmul.f32 %v364_v24, %v703_v57  ;;  %v461_v38 = vmul.f32 %v340_v31, %v697_v52  ;;  %v462_v39 = vmul.f32 %v344_v32, %v707_v60 }
  0x48   :  { %v463_v40 = vmul.f32 %v340_v31, %v703_v57  ;;  %v464_v41 = vmul.f32 %v344_v32, %v709_v63  ;;  %v465_v42 = vmul.f32 %v348_v33, %v697_v52  ;;  %v466_v43 = vmul.f32 %v352_v34, %v707_v60  ;;  %537 = vst [vmem:[#allocation5 + $0x180] sm:$0xff] %v473_v35 }
  0x49   :  { %v467_v44 = vmul.f32 %v348_v33, %v703_v57  ;;  %v468_v45 = vmul.f32 %v352_v34, %v709_v63  ;;  %538 = vst [vmem:[#allocation5 + $0x188] sm:$0xff] %v474_v36  ;;  %539 = vst [vmem:[#allocation5 + $0x190] sm:$0xff] %v475_v37  ;;  %v356_v46 = vrot.slane %v263_v22, %v657_v8 }
  0x4a   :  { %525 = vst [vmem:[#allocation5 + $0x120] sm:$0xff] %v461_v38  ;;  %526 = vst [vmem:[#allocation5 + $0x128] sm:$0xff] %v462_v39  ;;  %v360_v47 = vrot.slane %v263_v22, %v660_v9  ;;  %v476_v48 = vmul.f32 %v368_v25, %v709_v63  ;;  %v372_v49 = vrot.slane %v260_v20, %v657_v8 }
  0x4b   :  { %527 = vst [vmem:[#allocation5 + $0x130] sm:$0xff] %v463_v40  ;;  %528 = vst [vmem:[#allocation5 + $0x138] sm:$0xff] %v464_v41  ;;  %v376_v50 = vrot.slane %v260_v20, %v660_v9  ;;  %v380_v51 = vrot.slane %v262_v26, %v657_v8  ;;  %v384_v53 = vrot.slane %v262_v26, %v660_v9 }
  0x4c   :  { %529 = vst [vmem:[#allocation5 + $0x140] sm:$0xff] %v465_v42  ;;  %530 = vst [vmem:[#allocation5 + $0x148] sm:$0xff] %v466_v43  ;;  %v264_v54 = vcombine.high %v260_v20, %v260_v20  ;;  %v469_v55 = vmul.f32 %v356_v46, %v697_v52  ;;  %v470_v56 = vmul.f32 %v360_v47, %v707_v60 }
  0x4d   :  { %531 = vst [vmem:[#allocation5 + $0x150] sm:$0xff] %v467_v44  ;;  %532 = vst [vmem:[#allocation5 + $0x158] sm:$0xff] %v468_v45  ;;  %v471_v58 = vmul.f32 %v356_v46, %v703_v57  ;;  %v472_v59 = vmul.f32 %v360_v47, %v709_v63  ;;  %v477_v61 = vmul.f32 %v372_v49, %v697_v52 }
  0x4e   :  { %540 = vst [vmem:[#allocation5 + $0x198] sm:$0xff] %v476_v48  ;;  %v478_v62 = vmul.f32 %v376_v50, %v707_v60  ;;  %v479_v0 = vmul.f32 %v372_v49, %v703_v57  ;;  %v480_v1 = vmul.f32 %v376_v50, %v709_v63  ;;  %533 = vst [vmem:[#allocation5 + $0x160] sm:$0xff] %v469_v55 }
  0x4f   :  { %534 = vst [vmem:[#allocation5 + $0x168] sm:$0xff] %v470_v56  ;;  %535 = vst [vmem:[#allocation5 + $0x170] sm:$0xff] %v471_v58  ;;  %v481_v2 = vmul.f32 %v380_v51, %v697_v52  ;;  %v482_v3 = vmul.f32 %v384_v53, %v707_v60  ;;  %v483_v4 = vmul.f32 %v380_v51, %v703_v57 }
  0x50   :  { %536 = vst [vmem:[#allocation5 + $0x178] sm:$0xff] %v472_v59  ;;  %v484_v5 = vmul.f32 %v384_v53, %v709_v63  ;;  %541 = vst [vmem:[#allocation5 + $0x1a0] sm:$0xff] %v477_v61  ;;  %v388_v6 = vrot.slane %v264_v54, %v657_v8  ;;  %v392_v7 = vrot.slane %v264_v54, %v660_v9 }
  0x51   :  { %542 = vst [vmem:[#allocation5 + $0x1a8] sm:$0xff] %v478_v62  ;;  %543 = vst [vmem:[#allocation5 + $0x1b0] sm:$0xff] %v479_v0 }
  0x52   :  { %544 = vst [vmem:[#allocation5 + $0x1b8] sm:$0xff] %v480_v1  ;;  %545 = vst [vmem:[#allocation5 + $0x1c0] sm:$0xff] %v481_v2  ;;  %v485_v10 = vmul.f32 %v388_v6, %v697_v52  ;;  %v486_v11 = vmul.f32 %v392_v7, %v707_v60  ;;  %v487_v12 = vmul.f32 %v388_v6, %v703_v57 }
  0x53   :  { %546 = vst [vmem:[#allocation5 + $0x1c8] sm:$0xff] %v482_v3  ;;  %547 = vst [vmem:[#allocation5 + $0x1d0] sm:$0xff] %v483_v4  ;;  %v488_v13 = vmul.f32 %v392_v7, %v709_v63 }
  0x54   :  { %548 = vst [vmem:[#allocation5 + $0x1d8] sm:$0xff] %v484_v5  ;;  %549 = vst [vmem:[#allocation5 + $0x1e0] sm:$0xff] %v485_v10 }
  0x55   :  { %550 = vst [vmem:[#allocation5 + $0x1e8] sm:$0xff] %v486_v11  ;;  %551 = vst [vmem:[#allocation5 + $0x1f0] sm:$0xff] %v487_v12 }
  0x56   :  { %552 = vst [vmem:[#allocation5 + $0x1f8] sm:$0xff] %v488_v13 }
  0x57   :  { %612 = shalt.err (!%p609_p12)
}
  0x58   :  { %s613_s22 = scalar_lea.hbm %s844_s1, 8192 }
  0x59   :  { %p614_p13 = scmp.ne.s32.totalorder %s844_s1, %s613_s22  ;;  %p617_p0 = scmp.lt.u32.totalorder %s613_s22, %s844_s1 }
  0x5b   :  { %p619_p1 = pnand %p617_p0, %p614_p13 }
  0x5d   :  { %622 = shalt.err (!%p619_p1)
}
  0x5e   :  { %s630_s27 = smov 256   ;;  %s631_s28 = smov 16  }
  0x5f   :  { %564 = dma.vmem_to_hbm [thread:$0]  %s559_s18, 8192, %s844_s1, [#allocation4], %s630_s27, %s630_s27, %s631_s28  }
  0x60   :  { %625 = dma.done.wait [#allocation4], 8192  }
  0x61   :  { %626 = vsyncadd [#allocation4], 4294959104 }
  0x62   :  { %568 = vsyncpa [#allocation3], 1 }
  0x63   :  { %569 = vsyncpa [#allocation4], 1 }

</bundles_post_ra>
